<compile_context>
chip_gen: v7x
topology: tpu7x:2x2x1
jax: 0.10.0
libtpu: 0.0.40
codegen_flags: <defaults>
</compile_context>

<pallas_src>
import functools

import jax
import jax.numpy as jnp
from jax import lax
from jax.experimental import pallas as pl
from jax.experimental.pallas import tpu as pltpu


def _vmem_capacity_bytes():
    try:
        return int(pltpu.get_tpu_info().vmem_capacity_bytes)
    except Exception:
        return 64 * 1024 * 1024          # assume v7x per-TC VMEM (most restrictive)


def _budgets():
    physical = _vmem_capacity_bytes()
    # leave headroom below physical; cap so v5e/v6e do not over-reserve
    vmem_limit = max(32 << 20, min(physical - (16 << 20), 96 << 20))
    block_budget = vmem_limit // 6       # pass 2 needs ~4x block (dbl-buf in + out)
    fast_path_bytes = vmem_limit // 3    # x + out resident, plus headroom
    return physical, vmem_limit, block_budget, fast_path_bytes


def _choose_tiles(N, C, L, itemsize, block_budget):
    """TL: multiple of 128 dividing L (or full L if ragged), grown toward full L
    first (lane-dense, contiguous DMA runs).  TN: largest divisor of N fitting the
    remaining block budget (amortizes per-grid-step overhead)."""
    if L % 128 != 0:
        TL = L                                   # ragged L: full lane extent
    else:
        TL = 128
        while (L % (TL * 2) == 0) and (C * (TL * 2) * itemsize <= block_budget):
            TL *= 2
    max_tn = max(1, block_budget // max(1, C * TL * itemsize))
    TN = 1
    for d in range(1, N + 1):
        if N % d == 0 and d <= max_tn:
            TN = d
    return TN, TL


# ----------------------------- kernels ---------------------------------------


def _fused_kernel(x_ref, gamma_ref, beta_ref, o_ref, *, eps, inv_n):
    """Whole array resident: relu -> batch stats -> normalize, one HBM round trip."""
    x = x_ref[...].astype(jnp.float32)           # (N, C, L)
    y = jnp.maximum(x, 0.0)                      # post-activation BN: relu first
    yn = jnp.sum(y, axis=0)                      # (C, L)  VALU adds over batch
    qn = jnp.sum(y * y, axis=0)                  # (C, L)
    s = jnp.sum(yn, axis=-1, keepdims=True)      # (C, 1)  single XLU lane reduce
    q = jnp.sum(qn, axis=-1, keepdims=True)      # (C, 1)
    mean = s * inv_n
    var = jnp.maximum(q * inv_n - mean * mean, 0.0)   # biased var, cancel guard
    inv_std = lax.rsqrt(var + eps)
    scale = gamma_ref[0] * inv_std               # (C, 1)  affine folded in
    shift = beta_ref[0] - mean * scale
    C = y.shape[1]
    o_ref[...] = (y * scale.reshape(1, C, 1) + shift.reshape(1, C, 1)).astype(o_ref.dtype)


def _stats_kernel(x_ref, psum_ref, psq_ref):
    """Per-tile partial sum / sum-of-squares of relu(x) -> own output slot.
    No resident accumulator, so both grid axes can be 'parallel' (megacore)."""
    x = x_ref[...].astype(jnp.float32)           # (TN, C, TL)
    y = jnp.maximum(x, 0.0)
    yn = jnp.sum(y, axis=0)                      # (C, TL)  VALU adds over TN
    qn = jnp.sum(y * y, axis=0)
    psum_ref[0, 0] = jnp.sum(yn, axis=-1, keepdims=True)   # (C, 1)
    psq_ref[0, 0] = jnp.sum(qn, axis=-1, keepdims=True)    # (C, 1)


def _normalize_kernel(x_ref, scale_ref, shift_ref, o_ref):
    x = x_ref[...].astype(jnp.float32)           # (TN, C, TL)
    y = jnp.maximum(x, 0.0)
    o_ref[...] = (y * scale_ref[...] + shift_ref[...]).astype(o_ref.dtype)


# ----------------------------- wrapper ----------------------------------------


def batchnorm_plus_activision(x, gamma, beta, *, eps=1e-5, block_budget_bytes=None):
    """x: (N, C, L). Returns BatchNorm1d(relu(x)) with training-mode batch stats."""
    N, C, L = x.shape
    if N * L == 0:
        return x

    physical, vmem_limit, auto_block_budget, fast_path_bytes = _budgets()
    itemsize = jnp.dtype(x.dtype).itemsize
    x_bytes = N * C * L * itemsize
    inv_n = 1.0 / float(N * L)

    gamma3 = gamma.reshape(1, C, 1).astype(jnp.float32)
    beta3 = beta.reshape(1, C, 1).astype(jnp.float32)

    # ---- fast path: whole array fits in VMEM -> fused single kernel ----------
    if block_budget_bytes is None and x_bytes <= fast_path_bytes:
        full_spec = pl.BlockSpec((N, C, L), lambda: (0, 0, 0))
        param_spec0 = pl.BlockSpec((1, C, 1), lambda: (0, 0, 0))
        return pl.pallas_call(
            functools.partial(_fused_kernel, eps=eps, inv_n=inv_n),
            out_shape=jax.ShapeDtypeStruct((N, C, L), x.dtype),
            in_specs=[full_spec, param_spec0, param_spec0],
            out_specs=full_spec,
            compiler_params=pltpu.CompilerParams(vmem_limit_bytes=vmem_limit),
        )(x, gamma3, beta3)

    # ---- tiled two-pass path --------------------------------------------------
    block_budget = auto_block_budget if block_budget_bytes is None else block_budget_bytes
    TN, TL = _choose_tiles(N, C, L, itemsize, block_budget)

    # VMEM guard (only reachable via the ragged-L full-extent branch):
    block_bytes = TN * C * TL * itemsize
    call_vmem_limit = vmem_limit
    if 4 * block_bytes + (2 << 20) > vmem_limit:
        TN = 1
        block_bytes = C * TL * itemsize
        call_vmem_limit = max(vmem_limit, min(physical, 4 * block_bytes + (4 << 20)))

    ni, nj = N // TN, L // TL
    x_spec = pl.BlockSpec((TN, C, TL), lambda i, j: (i, 0, j))
    part_spec = pl.BlockSpec((1, 1, C, 1), lambda i, j: (i, j, 0, 0))
    param_spec = pl.BlockSpec((1, C, 1), lambda i, j: (0, 0, 0))

    # pass 1: per-tile partial stats; both axes parallel -> megacore-shardable.
    psum, psq = pl.pallas_call(
        _stats_kernel,
        out_shape=(jax.ShapeDtypeStruct((ni, nj, C, 1), jnp.float32),
                   jax.ShapeDtypeStruct((ni, nj, C, 1), jnp.float32)),
        grid_spec=pltpu.PrefetchScalarGridSpec(
            num_scalar_prefetch=0,
            grid=(ni, nj),
            in_specs=[x_spec],
            out_specs=(part_spec, part_spec)),
        compiler_params=pltpu.CompilerParams(
            dimension_semantics=("parallel", "parallel"),
            vmem_limit_bytes=call_vmem_limit),
    )(x)

    # tiny cross-tile combine + affine fold in plain XLA (negligible cost)
    s = jnp.sum(psum, axis=(0, 1))               # (C, 1)
    q = jnp.sum(psq, axis=(0, 1))                # (C, 1)
    mean = s * inv_n
    var = jnp.maximum(q * inv_n - mean * mean, 0.0)
    inv_std = lax.rsqrt(var + eps)
    scale = gamma3[0] * inv_std                  # (C, 1)
    shift = beta3[0] - mean * scale
    scale3 = scale.reshape(1, C, 1)
    shift3 = shift.reshape(1, C, 1)

    # pass 2: out = relu(x) * scale + shift  (parallel axes -> megacore)
    out = pl.pallas_call(
        _normalize_kernel,
        out_shape=jax.ShapeDtypeStruct((N, C, L), x.dtype),
        grid_spec=pltpu.PrefetchScalarGridSpec(
            num_scalar_prefetch=0,
            grid=(ni, nj),
            in_specs=[x_spec, param_spec, param_spec],
            out_specs=x_spec),
        compiler_params=pltpu.CompilerParams(
            dimension_semantics=("parallel", "parallel"),
            vmem_limit_bytes=call_vmem_limit),
    )(x, scale3, shift3)
    return out


def _reference(x, gamma, beta, eps=1e-5):
    y = jnp.maximum(x, 0.0)
    mean = jnp.mean(y, axis=(0, 2), keepdims=True)
    var = jnp.mean((y - mean) ** 2, axis=(0, 2), keepdims=True)
    return (y - mean) / jnp.sqrt(var + eps) * gamma[None, :, None] + beta[None, :, None]


if __name__ == "__main__":
    key = jax.random.PRNGKey(0)

    # case 1: the module's toy shape (n_filters_in = C = 4) -> fused fast path
    N, C, L = 2, 4, 16
    x = jax.random.normal(key, (N, C, L), dtype=jnp.float32)
    gamma = jnp.ones((C,), dtype=jnp.float32)       # nn.BatchNorm1d default init
    beta = jnp.zeros((C,), dtype=jnp.float32)
    out = jax.block_until_ready(batchnorm_plus_activision(x, gamma, beta))
    assert out.shape == (N, C, L)
    assert jnp.allclose(out, _reference(x, gamma, beta), atol=1e-4, rtol=1e-4)

    # case 2: lane-aligned channels/length -> still fused fast path
    N2, C2, L2 = 4, 8, 256
    x2 = jax.random.normal(jax.random.PRNGKey(1), (N2, C2, L2), dtype=jnp.float32)
    g2 = jnp.ones((C2,), dtype=jnp.float32)
    b2 = jnp.zeros((C2,), dtype=jnp.float32)
    out2 = jax.block_until_ready(batchnorm_plus_activision(x2, g2, b2))
    assert jnp.allclose(out2, _reference(x2, g2, b2), atol=1e-4, rtol=1e-4)

    # case 3: force the tiled two-pass path with a multi-tile (4 x 2) grid
    N3, C3, L3 = 4, 8, 512
    x3 = jax.random.normal(jax.random.PRNGKey(2), (N3, C3, L3), dtype=jnp.float32)
    g3 = jnp.ones((C3,), dtype=jnp.float32)
    b3 = jnp.zeros((C3,), dtype=jnp.float32)
    out3 = jax.block_until_ready(
        batchnorm_plus_activision(x3, g3, b3, block_budget_bytes=8 * 1024))
    assert jnp.allclose(out3, _reference(x3, g3, b3), atol=1e-4, rtol=1e-4)

    print("KERNEL_OK")
</pallas_src>

<mosaic_0001>
module attributes {stable_mosaic.version = 11 : i64} {
  func.func @_fused_kernel(%arg0: memref<2x4x16xf32, #tpu.memory_space<vmem>>, %arg1: memref<1x4x1xf32, #tpu.memory_space<vmem>>, %arg2: memref<1x4x1xf32, #tpu.memory_space<vmem>>, %arg3: memref<2x4x16xf32, #tpu.memory_space<vmem>>) attributes {dimension_semantics = [], scalar_prefetch = 0 : i64, scratch_operands = 0 : i64, tpu.core_type = #tpu.core_type<tc>} {
    %c0 = arith.constant 0 : index
    %c0_0 = arith.constant 0 : index
    %c0_1 = arith.constant 0 : index
    %0 = vector.load %arg0[%c0, %c0_0, %c0_1] : memref<2x4x16xf32, #tpu.memory_space<vmem>>, vector<2x4x16xf32>
    %cst = arith.constant 0.000000e+00 : f32
    %1 = vector.broadcast %cst : f32 to vector<2x4x16xf32>
    %2 = arith.maximumf %0, %1 : vector<2x4x16xf32>
    %cst_2 = arith.constant dense<0.000000e+00> : vector<4x16xf32>
    %3 = vector.multi_reduction <add>, %2, %cst_2 [0] : vector<2x4x16xf32> to vector<4x16xf32>
    %4 = arith.mulf %2, %2 : vector<2x4x16xf32>
    %cst_3 = arith.constant dense<0.000000e+00> : vector<4x16xf32>
    %5 = vector.multi_reduction <add>, %4, %cst_3 [0] : vector<2x4x16xf32> to vector<4x16xf32>
    %cst_4 = arith.constant dense<0.000000e+00> : vector<4xf32>
    %6 = vector.multi_reduction <add>, %3, %cst_4 [1] : vector<4x16xf32> to vector<4xf32>
    %7 = vector.shape_cast %6 : vector<4xf32> to vector<4x1xf32>
    %cst_5 = arith.constant dense<0.000000e+00> : vector<4xf32>
    %8 = vector.multi_reduction <add>, %5, %cst_5 [1] : vector<4x16xf32> to vector<4xf32>
    %9 = vector.shape_cast %8 : vector<4xf32> to vector<4x1xf32>
    %cst_6 = arith.constant 3.125000e-02 : f32
    %10 = vector.broadcast %cst_6 : f32 to vector<4x1xf32>
    %11 = arith.mulf %7, %10 : vector<4x1xf32>
    %cst_7 = arith.constant 3.125000e-02 : f32
    %12 = vector.broadcast %cst_7 : f32 to vector<4x1xf32>
    %13 = arith.mulf %9, %12 : vector<4x1xf32>
    %14 = arith.mulf %11, %11 : vector<4x1xf32>
    %15 = arith.subf %13, %14 : vector<4x1xf32>
    %cst_8 = arith.constant 0.000000e+00 : f32
    %16 = vector.broadcast %cst_8 : f32 to vector<4x1xf32>
    %17 = arith.maximumf %15, %16 : vector<4x1xf32>
    %cst_9 = arith.constant 9.99999974E-6 : f32
    %18 = vector.broadcast %cst_9 : f32 to vector<4x1xf32>
    %19 = arith.addf %17, %18 : vector<4x1xf32>
    %20 = math.rsqrt %19 : vector<4x1xf32>
    %c0_10 = arith.constant 0 : index
    %c0_11 = arith.constant 0 : index
    %c0_12 = arith.constant 0 : index
    %21 = vector.load %arg1[%c0_10, %c0_11, %c0_12] : memref<1x4x1xf32, #tpu.memory_space<vmem>>, vector<1x4x1xf32>
    %22 = vector.shape_cast %21 : vector<1x4x1xf32> to vector<4x1xf32>
    %23 = arith.mulf %22, %20 : vector<4x1xf32>
    %c0_13 = arith.constant 0 : index
    %c0_14 = arith.constant 0 : index
    %c0_15 = arith.constant 0 : index
    %24 = vector.load %arg2[%c0_13, %c0_14, %c0_15] : memref<1x4x1xf32, #tpu.memory_space<vmem>>, vector<1x4x1xf32>
    %25 = vector.shape_cast %24 : vector<1x4x1xf32> to vector<4x1xf32>
    %26 = arith.mulf %11, %23 : vector<4x1xf32>
    %27 = arith.subf %25, %26 : vector<4x1xf32>
    %28 = vector.shape_cast %23 : vector<4x1xf32> to vector<1x4x1xf32>
    %29 = vector.broadcast %28 : vector<1x4x1xf32> to vector<2x4x16xf32>
    %30 = arith.mulf %2, %29 : vector<2x4x16xf32>
    %31 = vector.shape_cast %27 : vector<4x1xf32> to vector<1x4x1xf32>
    %32 = vector.broadcast %31 : vector<1x4x1xf32> to vector<2x4x16xf32>
    %33 = arith.addf %30, %32 : vector<2x4x16xf32>
    %c0_16 = arith.constant 0 : index
    %c0_17 = arith.constant 0 : index
    %c0_18 = arith.constant 0 : index
    %34 = vector.load %arg3[%c0_16, %c0_17, %c0_18] : memref<2x4x16xf32, #tpu.memory_space<vmem>>, vector<2x4x16xf32>
    tpu.vector_store %arg3[%c0_16, %c0_17, %c0_18], %33 {strides = array<i32>} : memref<2x4x16xf32, #tpu.memory_space<vmem>>, vector<2x4x16xf32>,
    return
  }
}

</mosaic_0001>

<bundles_post_ra>
// kernel: tpu_custom_call.1
= control target key start
LH: loop header
LB: loop body
LE: loop exit
PB: predicated region body
PF: predicated region fallthrough
CT: control target
= control target key end

     0   :  { %vm19_vm0 = vcmask 125952   ;;  %s166_s0 = inlined_call_operand.vmem [shape: f32[2,4,16], index: 0, kind: input, shape index: {}]   ;;  %s167_s1 = inlined_call_operand.vmem [shape: f32[1,4,1], index: 1, kind: input, shape index: {}]   ;;  %s168_s2 = inlined_call_operand.vmem [shape: f32[1,4,1], index: 2, kind: input, shape index: {}]   ;;  %s169_s3 = inlined_call_operand.hbm [shape: f32[2,4,16], index: 3, kind: output, shape index: {}]  }
   0x1   :  { %v15_v0 = vld [vmem:[%s166_s0] sm:$0xf]  ;;  %v16_v1 = vld [vmem:[%s166_s0 + $0x4] sm:$0xf] }
   0x2   :  { %v17_v2 = vmax.f32 %v15_v0, 0.0  ;;  %v18_v3 = vmax.f32 %v16_v1, 0.0 }
   0x3   :  { %8 = vsyncpa [#allocation3], 0  ;;  %v110_v14 = vmov 0   ;;  %v41_v23 = vld [vmem:[%s167_s1] sm:$0xf]  ;;  %s111_s19 = smov [#allocation2]  }
   0x4   :  { %v20_v4 = vsel %vm19_vm0, %v17_v2, 0.0  ;;  %v21_v5 = vsel %vm19_vm0, %v18_v3, 0.0  ;;  %v23_v6 = vmul.f32 %v17_v2, %v17_v2  ;;  %v24_v7 = vmul.f32 %v18_v3, %v18_v3  ;;  %82 = vset.pattern.permute.xlu1 %v110_v14  ;;  %83 = vset.pattern.permute.xlu0 %v110_v14  ;;  %v43_v26 = vld [vmem:[%s168_s2] sm:$0xf]  ;;  %s67_s20 = sshll.u32 %s111_s19, 4  ;;  %s68_s20 = int_to_ptr.vmem [resolvable:$true] %s67_s20 }
   0x5   :  { %v22_v8 = vadd.f32 %v21_v5, %v20_v4  ;;  %s86_s1 = scalar_lea.vmem %s68_s20, 128  ;;  %p91_p1 = scmp.lt.s32.totalorder %s68_s20, %s68_s20 }
   0x6   :  { %v25_v9 = vsel %vm19_vm0, %v23_v6, 0.0  ;;  %v26_v10 = vsel %vm19_vm0, %v24_v7, 0.0  ;;  %p87_p0 = scmp.ne.s32.totalorder %s68_s20, %s86_s1  ;;  %p92_p2 = scmp.lt.s32.totalorder %s86_s1, %s86_s1 }
   0x7   :  { %v28_v11 = vsel %vm19_vm0, %v22_v8, 0.0  ;;  %v27_v12 = vadd.f32 %v26_v10, %v25_v9 }
   0x8   :  { %29 = vadd.xlane.f32.xlu0 %v28_v11  ;;  %p93_p3 = por %p92_p2, %p91_p1 }
   0x9   :  { %v31_v13 = vsel %vm19_vm0, %v27_v12, 0.0 }
   0xa   :  { %p94_p4 = pnand %p93_p3, %p87_p0 }
   0xc   :  { %32 = vadd.xlane.f32.xlu0 %v31_v13 }
  0x95   :  { %v30_v15 = vpop.xlane.xlu0 %29 }
  0x96   :  { %v34_v16 = vmul.f32 0.03125, %v30_v15 }
  0x98   :  { %v36_v18 = vmul.f32 %v34_v16, %v34_v16 }
  0x99   :  { %v33_v17 = vpop.xlane.xlu0 %32 }
  0x9a   :  { %v35_v19 = vmul.f32 0.03125, %v33_v17 }
  0x9c   :  { %v37_v20 = vsub.f32 %v35_v19, %v36_v18 }
  0x9e   :  { %v38_v21 = vmax.f32 %v37_v20, 0.0 }
  0xa0   :  { %v39_v22 = vadd.f32 1e-05, %v38_v21 }
  0xa2   :  { %84 = vrsqrt.f32 %v39_v22 }
  0xac   :  { %v85_v24 = vpop.eup %84 }
  0xad   :  { %v42_v25 = vmul.f32 %v85_v24, %v41_v23 }
  0xaf   :  { %48 = vperm.xlu1 %82, %v42_v25   ;;  %v44_v27 = vmul.f32 %v42_v25, %v34_v16 }
  0xb1   :  { %v45_v28 = vsub.f32 %v43_v26, %v44_v27 }
  0xb3   :  { %55 = vperm.xlu1 %82, %v45_v28  }
 0x12e   :  { %v49_v29 = vpop.permute.xlu1 %48 }
 0x12f   :  { %v51_v30 = vmul.f32 %v49_v29, %v17_v2  ;;  %v52_v31 = vmul.f32 %v49_v29, %v18_v3 }
 0x132   :  { %v56_v32 = vpop.permute.xlu1 %55 }
 0x133   :  { %v58_v33 = vadd.f32 %v56_v32, %v51_v30  ;;  %v59_v34 = vadd.f32 %v56_v32, %v52_v31 }
 0x135   :  { %60 = vst.msk [vmem:[#allocation2] sm:$0xf] %vm19_vm0, %v58_v33  ;;  %61 = vst.msk [vmem:[#allocation2 + $0x4] sm:$0xf] %vm19_vm0, %v59_v34 }
 0x136   :  { %97 = shalt.err (!%p94_p4)
}
 0x137   :  { %s98_s22 = scalar_lea.hbm %s169_s3, 128 }
 0x138   :  { %p99_p5 = scmp.ne.s32.totalorder %s169_s3, %s98_s22  ;;  %p102_p6 = scmp.lt.u32.totalorder %s98_s22, %s169_s3 }
 0x13a   :  { %p104_p7 = pnand %p102_p6, %p99_p5 }
 0x13c   :  { %107 = shalt.err (!%p104_p7)
}
 0x13d   :  { %s112_s27 = smov 64   ;;  %s113_s28 = smov 4  }
 0x13e   :  { %73 = dma.vmem_to_hbm [thread:$0]  %s68_s20, 128, %s169_s3, [#allocation3], %s112_s27, %s112_s27, %s113_s28  }
 0x13f   :  { %108 = dma.done.wait [#allocation3], 128  }
 0x140   :  { %109 = vsyncadd [#allocation3], 4294967168 }
 0x141   :  { %77 = vsyncpa [#allocation3], 1 }

</bundles_post_ra>
